<compile_context>
chip_gen: v7x
topology: tpu7x:2x2x1
jax: 0.10.0
libtpu: 0.0.40
codegen_flags: <defaults>
</compile_context>

<pallas_src>
import math
from functools import partial

import jax
import jax.numpy as jnp
from jax.experimental import pallas as pl
from jax.experimental.pallas import tpu as pltpu


# ----------------------------------------------------------------------------
# small math helpers usable inside Pallas kernels
# ----------------------------------------------------------------------------
def _sigmoid(x):
    return 1.0 / (1.0 + jnp.exp(-x))


def _softplus(x):
    return jnp.maximum(x, 0.0) + jnp.log(1.0 + jnp.exp(-jnp.abs(x)))


def _apply_act(x, act):
    if act == "none":
        return x
    if act == "relu":
        return jnp.maximum(x, 0.0)
    if act == "lrelu":                         # MONAI LeakyReLU(0.01)
        return jnp.where(x >= 0.0, x, 0.01 * x)
    if act == "silu":
        return x * _sigmoid(x)
    if act == "sigmoid":
        return _sigmoid(x)
    if act == "gelu":
        # tanh approximation (EUP tanh).  TODO(synk): reference uses exact erf GELU.
        c = 0.7978845608028654
        return 0.5 * x * (1.0 + jnp.tanh(c * (x + 0.044715 * x * x * x)))
    raise ValueError(act)


def _rup(x, m):
    return ((x + m - 1) // m) * m


def _row_tile(rows):
    for t in (512, 256, 128, 64, 32, 16, 8):
        if rows >= t and rows % t == 0:
            return t
    return rows


# ----------------------------------------------------------------------------
# Pallas kernels
# ----------------------------------------------------------------------------
def _mm_kernel(*refs, act, nk, has_res):
    """Tiled matmul + bias + activation (+ optional fused residual)."""
    if has_res:
        a_ref, b_ref, bias_ref, r_ref = refs[:4]
        rest = refs[4:]
    else:
        a_ref, b_ref, bias_ref = refs[:3]
        r_ref = None
        rest = refs[3:]

    if nk == 1:
        (o_ref,) = rest
        acc = jnp.dot(a_ref[...], b_ref[...], preferred_element_type=jnp.float32)
        out = _apply_act(acc + bias_ref[...], act)
        if r_ref is not None:
            out = out + r_ref[...]
        o_ref[...] = out
    else:
        o_ref, acc_ref = rest

        @pl.when(pl.program_id(2) == 0)
        def _init():
            acc_ref[...] = jnp.zeros_like(acc_ref)

        acc_ref[...] += jnp.dot(a_ref[...], b_ref[...],
                                preferred_element_type=jnp.float32)

        @pl.when(pl.program_id(2) == pl.num_programs(2) - 1)
        def _fin():
            out = _apply_act(acc_ref[...] + bias_ref[...], act)
            if r_ref is not None:
                out = out + r_ref[...]
            o_ref[...] = out


def _instnorm_kernel(*refs, act, eps, scale, has_res, res_after_act):
    """InstanceNorm (affine=False) + act, optionally fused residual & scale."""
    # TODO(synk): two-pass tiled mean/var over HW for very large images.
    if has_res:
        x_ref, r_ref, o_ref = refs
    else:
        x_ref, o_ref = refs
        r_ref = None
    x = x_ref[...]                                    # (1, HW, TC)
    mu = jnp.mean(x, axis=1, keepdims=True)
    var = jnp.mean(jnp.square(x - mu), axis=1, keepdims=True)
    y = (x - mu) * jax.lax.rsqrt(var + eps)
    if r_ref is not None:
        if res_after_act:
            y = _apply_act(y, act) + r_ref[...]
        else:
            y = _apply_act(y + r_ref[...], act)
    else:
        y = _apply_act(y, act)
    if scale != 1.0:
        y = y * scale
    o_ref[...] = y


def _ln_kernel(x_ref, w_ref, b_ref, o_ref, *, eps):
    x = x_ref[...]                                    # (1, TL, C)
    mu = jnp.mean(x, axis=-1, keepdims=True)
    var = jnp.mean(jnp.square(x - mu), axis=-1, keepdims=True)
    o_ref[...] = (x - mu) * jax.lax.rsqrt(var + eps) * w_ref[...] + b_ref[...]


def _dwconv_kernel(xp_ref, w_ref, b_ref, o_ref, *, L, K):
    # causal depthwise conv (groups = channels) followed by SiLU
    acc = jnp.zeros(o_ref.shape, jnp.float32)
    for k in range(K):
        acc = acc + xp_ref[:, pl.ds(k, L), :] * w_ref[pl.ds(k, 1), :]
    acc = acc + b_ref[...]
    o_ref[...] = acc * _sigmoid(acc)


def _scan_kernel(delta_ref, u_ref, z_ref, B_ref, C_ref, AT_ref, Dv_ref, o_ref,
                 h_s, dA_s, bdu_s, cb_s, ys_s, *, TL, N):
    """Mamba selective scan + fused softplus/gating.

    Grid: (batch, d_inner blocks, L tiles).  The recurrent state h (N, TD)
    is carried in VMEM scratch across L tiles; everything full-L stays in HBM
    and is pipelined in (1, TL, ...) blocks by BlockSpec.
    """
    @pl.when(pl.program_id(2) == 0)
    def _init():
        h_s[...] = jnp.zeros_like(h_s)

    # vectorized per-tile precompute (keeps the serial loop free of
    # transcendentals, broadcasts and stores larger than one y row)
    dt = _softplus(delta_ref[0])                      # (TL, TD)
    uu = u_ref[0]                                     # (TL, TD)
    du = dt * uu
    AT = AT_ref[...]                                  # (N, TD)
    dA_s[...] = jnp.exp(AT[None, :, :] * dt[:, None, :])          # (TL, N, TD)
    bdu_s[...] = B_ref[0][:, :, None] * du[:, None, :]            # (TL, N, TD)
    cb_s[...] = jnp.broadcast_to(C_ref[0][:, :, None], cb_s.shape)

    # minimal serial recurrence: h_t = a_t*h + b_t ; y_t = sum_n C_t[n]*h[n,:]
    h = h_s[...]
    for j in range(TL):                               # static unroll
        h = dA_s[j] * h + bdu_s[j]
        ys_s[pl.ds(j, 1), :] = jnp.sum(cb_s[j] * h, axis=0, keepdims=True)
    h_s[...] = h

    # fused output gating:  y = (y + D*u) * SiLU(z)
    z = z_ref[0]
    o_ref[0] = (ys_s[...] + Dv_ref[...] * uu) * (z * _sigmoid(z))


def _out_head_kernel(x_ref, w_ref, b_ref, o_ref, *, nout):
    # tiny-N pointwise conv + sigmoid (avoids padding a GEMM to 128 columns)
    x = x_ref[...]                                    # (TR, C)
    for j in range(nout):
        v = jnp.sum(x * w_ref[pl.ds(j, 1), :], axis=-1, keepdims=True)
        v = v + b_ref[0:1, pl.ds(j, 1)]
        o_ref[:, pl.ds(j, 1)] = _sigmoid(v)


# ----------------------------------------------------------------------------
# jitted Pallas wrappers
# ----------------------------------------------------------------------------
@partial(jax.jit, static_argnames=("act",))
def matmul_bias_act(x, w, b, act="none", res=None):
    """(M,K)@(K,N)+b (+res) with fused activation; bf16 MXU / f32 accumulate."""
    M, K = x.shape
    N = w.shape[1]
    a = x.astype(jnp.bfloat16)
    wb = w.astype(jnp.bfloat16)

    # lane-dense epilogue: pad N to a multiple of 128 with zero columns
    Np = _rup(N, 128)
    if Np != N:
        wb = jnp.pad(wb, ((0, 0), (0, Np - N)))
    bp = jnp.pad(b.astype(jnp.float32).reshape(1, N), ((0, 0), (0, Np - N)))
    TN = 256 if Np % 256 == 0 else 128

    if M >= 512 and M % 512 == 0:
        TM = 512
    elif M >= 256:
        TM = 256
    else:
        TM = _rup(M, 8)
    Mp = _rup(M, TM)

    # cap TK so K pipelines and blocks fit v5e's default scoped VMEM
    if K <= 2048:
        TK = K
    else:
        TK = 2048
        for t in (2048, 1920, 1792, 1664, 1536, 1408, 1280, 1152, 1024):
            if K % t == 0:
                TK = t
                break
    Kp = _rup(K, TK)
    nk = Kp // TK

    if Mp != M:
        a = jnp.pad(a, ((0, Mp - M), (0, 0)))
    if Kp != K:
        a = jnp.pad(a, ((0, 0), (0, Kp - K)))
        wb = jnp.pad(wb, ((0, Kp - K), (0, 0)))

    in_specs = [
        pl.BlockSpec((TM, TK), lambda i, j, k: (i, k)),
        pl.BlockSpec((TK, TN), lambda i, j, k: (k, j)),
        pl.BlockSpec((1, TN), lambda i, j, k: (0, j)),
    ]
    args = [a, wb, bp]
    has_res = res is not None
    if has_res:
        r = res.astype(jnp.float32)
        if Np != N:
            r = jnp.pad(r, ((0, 0), (0, Np - N)))
        if Mp != M:
            r = jnp.pad(r, ((0, Mp - M), (0, 0)))
        in_specs.append(pl.BlockSpec((TM, TN), lambda i, j, k: (i, j)))
        args.append(r)

    scratch = [] if nk == 1 else [pltpu.VMEM((TM, TN), jnp.float32)]

    out = pl.pallas_call(
        partial(_mm_kernel, act=act, nk=nk, has_res=has_res),
        out_shape=jax.ShapeDtypeStruct((Mp, Np), jnp.float32),
        grid=(Mp // TM, Np // TN, nk),
        in_specs=in_specs,
        out_specs=pl.BlockSpec((TM, TN), lambda i, j, k: (i, j)),
        scratch_shapes=scratch,
        compiler_params=pltpu.CompilerParams(
            dimension_semantics=("parallel", "parallel", "arbitrary")),
    )(*args)
    if Mp != M or Np != N:
        out = out[:M, :N]
    return out


@partial(jax.jit, static_argnames=("act", "res_after_act", "scale"))
def instnorm_act(x, act="none", res=None, res_after_act=False, scale=1.0):
    """InstanceNorm2d(affine=False, eps=1e-5) + act (+ fused residual); x NHWC."""
    B, H, W, C = x.shape
    xr = x.reshape(B, H * W, C)
    TC = 128 if C % 128 == 0 else C
    spec = pl.BlockSpec((1, H * W, TC), lambda b, c: (b, 0, c))
    args = [xr]
    in_specs = [spec]
    has_res = res is not None
    if has_res:
        args.append(res.astype(jnp.float32).reshape(B, H * W, C))
        in_specs.append(pl.BlockSpec((1, H * W, TC), lambda b, c: (b, 0, c)))
    out = pl.pallas_call(
        partial(_instnorm_kernel, act=act, eps=1e-5, scale=scale,
                has_res=has_res, res_after_act=res_after_act),
        out_shape=jax.ShapeDtypeStruct(xr.shape, jnp.float32),
        grid=(B, C // TC),
        in_specs=in_specs,
        out_specs=pl.BlockSpec((1, H * W, TC), lambda b, c: (b, 0, c)),
        compiler_params=pltpu.CompilerParams(
            dimension_semantics=("parallel", "parallel")),
    )(*args)
    return out.reshape(B, H, W, C)


@jax.jit
def layernorm(x, w, b):
    B, L, C = x.shape
    TL = 128 if L % 128 == 0 else L
    return pl.pallas_call(
        partial(_ln_kernel, eps=1e-5),
        out_shape=jax.ShapeDtypeStruct((B, L, C), jnp.float32),
        grid=(B, L // TL),
        in_specs=[
            pl.BlockSpec((1, TL, C), lambda i, l: (i, l, 0)),
            pl.BlockSpec((1, C), lambda i, l: (0, 0)),
            pl.BlockSpec((1, C), lambda i, l: (0, 0)),
        ],
        out_specs=pl.BlockSpec((1, TL, C), lambda i, l: (i, l, 0)),
        compiler_params=pltpu.CompilerParams(
            dimension_semantics=("parallel", "parallel")),
    )(x, w.reshape(1, C), b.reshape(1, C))


@jax.jit
def dwconv_silu(x, w, b):
    """Causal depthwise Conv1d(kernel=K, groups=D, pad=K-1)[:, :L] + SiLU."""
    Bn, L, D = x.shape
    K = w.shape[0]
    TD = 128 if D % 128 == 0 else D
    xp = jnp.pad(x, ((0, 0), (K - 1, 0), (0, 0)))
    return pl.pallas_call(
        partial(_dwconv_kernel, L=L, K=K),
        out_shape=jax.ShapeDtypeStruct((Bn, L, D), jnp.float32),
        grid=(Bn, D // TD),
        in_specs=[
            pl.BlockSpec((1, L + K - 1, TD), lambda i, d: (i, 0, d)),
            pl.BlockSpec((K, TD), lambda i, d: (0, d)),
            pl.BlockSpec((1, TD), lambda i, d: (0, d)),
        ],
        out_specs=pl.BlockSpec((1, L, TD), lambda i, d: (i, 0, d)),
        compiler_params=pltpu.CompilerParams(
            dimension_semantics=("parallel", "parallel")),
    )(xp, w, b.reshape(1, D))


@jax.jit
def selective_scan_gated(delta, u, z, Bm, Cm, AT, Dv):
    """y = (scan(softplus(delta), u, B, C, A) + D*u) * SiLU(z), per batch.

    Grid: (batch, d_inner blocks, L tiles); h carried in VMEM scratch across
    the (arbitrary) L axis, all scratch is O(TL * N * TD).
    """
    Bn, L, Din = delta.shape
    N = Bm.shape[-1]
    TD = 128 if Din % 128 == 0 else Din
    TL = 32 if L % 32 == 0 else L
    return pl.pallas_call(
        partial(_scan_kernel, TL=TL, N=N),
        out_shape=jax.ShapeDtypeStruct((Bn, L, Din), jnp.float32),
        grid=(Bn, Din // TD, L // TL),
        in_specs=[
            pl.BlockSpec((1, TL, TD), lambda b, d, l: (b, l, d)),   # delta
            pl.BlockSpec((1, TL, TD), lambda b, d, l: (b, l, d)),   # u
            pl.BlockSpec((1, TL, TD), lambda b, d, l: (b, l, d)),   # z
            pl.BlockSpec((1, TL, N), lambda b, d, l: (b, l, 0)),    # B
            pl.BlockSpec((1, TL, N), lambda b, d, l: (b, l, 0)),    # C
            pl.BlockSpec((N, TD), lambda b, d, l: (0, d)),          # A^T
            pl.BlockSpec((1, TD), lambda b, d, l: (0, d)),          # D
        ],
        out_specs=pl.BlockSpec((1, TL, TD), lambda b, d, l: (b, l, d)),
        scratch_shapes=[
            pltpu.VMEM((N, TD), jnp.float32),       # carried hidden state
            pltpu.VMEM((TL, N, TD), jnp.float32),   # exp(A*dt)
            pltpu.VMEM((TL, N, TD), jnp.float32),   # B*dt*u
            pltpu.VMEM((TL, N, TD), jnp.float32),   # C (lane-broadcast)
            pltpu.VMEM((TL, TD), jnp.float32),      # per-tile y
        ],
        compiler_params=pltpu.CompilerParams(
            dimension_semantics=("parallel", "parallel", "arbitrary")),
    )(delta, u, z, Bm, Cm, AT, Dv)


@jax.jit
def out_head_sigmoid(x, wt, b):
    """Final 1x1 conv (tiny out_chans) + sigmoid; x NHWC, wt (nout, C)."""
    Bq, H, W, C = x.shape
    nout = wt.shape[0]
    rows = Bq * H * W
    TR = _row_tile(rows)
    xr = x.reshape(rows, C)
    out = pl.pallas_call(
        partial(_out_head_kernel, nout=nout),
        out_shape=jax.ShapeDtypeStruct((rows, nout), jnp.float32),
        grid=(rows // TR,),
        in_specs=[
            pl.BlockSpec((TR, C), lambda i: (i, 0)),
            pl.BlockSpec((nout, C), lambda i: (0, 0)),
            pl.BlockSpec((1, nout), lambda i: (0, 0)),
        ],
        out_specs=pl.BlockSpec((TR, nout), lambda i: (i, 0)),
        compiler_params=pltpu.CompilerParams(dimension_semantics=("parallel",)),
    )(xr, wt, b.reshape(1, nout))
    return out.reshape(Bq, H, W, nout)


# ----------------------------------------------------------------------------
# plain-JAX glue: im2col (data movement only; the MACs run in the Pallas matmul)
# ----------------------------------------------------------------------------
def im2col(x, k, stride, pad):
    # TODO(synk): fuse into the conv matmul (halo'd image tiles) to kill the
    # k*k HBM read inflation; bf16 cast halves it in the meantime.
    x = x.astype(jnp.bfloat16)
    if pad > 0:
        x = jnp.pad(x, ((0, 0), (pad, pad), (pad, pad), (0, 0)))
    B, Hp, Wp, C = x.shape
    Ho = (Hp - k) // stride + 1
    Wo = (Wp - k) // stride + 1
    cols = []
    for i in range(k):
        for j in range(k):
            cols.append(x[:, i:i + stride * Ho:stride, j:j + stride * Wo:stride, :])
    return jnp.concatenate(cols, axis=-1)


def conv2d(x, p, stride, pad, act="none"):
    k = p["k"]
    cols = im2col(x, k, stride, pad)
    B, Ho, Wo, KC = cols.shape
    y = matmul_bias_act(cols.reshape(B * Ho * Wo, KC), p["w"], p["b"], act=act)
    return y.reshape(B, Ho, Wo, p["w"].shape[1])


# ----------------------------------------------------------------------------
# deterministic parameter init (weights stored in bf16, biases/norms in f32)
# ----------------------------------------------------------------------------
class _KeyGen:
    def __init__(self, seed):
        self.key = jax.random.PRNGKey(seed)

    def __call__(self):
        self.key, sub = jax.random.split(self.key)
        return sub


_KG = _KeyGen(1)


def rnd(shape, scale=0.05):
    return scale * jax.random.normal(_KG(), shape, dtype=jnp.float32)


def rndb(shape, scale=0.01):
    return scale * jax.random.normal(_KG(), shape, dtype=jnp.float32)


def conv_params(cin, cout, k, bias=True):
    w = rnd((k, k, cin, cout)).reshape(k * k * cin, cout).astype(jnp.bfloat16)
    b = rndb((cout,)) if bias else jnp.zeros((cout,), jnp.float32)
    return dict(w=w, b=b, k=k)


# ----------------------------------------------------------------------------
# blocks
# ----------------------------------------------------------------------------
def init_gsc(c):
    return dict(p1=conv_params(c, c, 3), p2=conv_params(c, c, 3),
                skip=conv_params(c, c, 1), final=conv_params(c, c, 1))


def gsc_forward(x, p):
    x1 = instnorm_act(conv2d(x, p["p1"], 1, 1), act="relu")
    x1 = instnorm_act(conv2d(x1, p["p2"], 1, 1), act="relu")
    # relu(IN(skip(x))) + x1   (skip-add fused into the skip-path instnorm)
    x12 = instnorm_act(conv2d(x, p["skip"], 1, 0), act="relu",
                       res=x1, res_after_act=True)
    # reference returns `x + x`  ->  fold the *2 into the final instnorm
    return instnorm_act(conv2d(x12, p["final"], 1, 0), act="relu", scale=2.0)


def init_mamba_layer(dim):
    # TODO(synk): MambaLayer source not provided; standard SegMamba MambaLayer
    # (LayerNorm -> Mamba(d_state=16, d_conv=4, expand=2) -> residual) assumed.
    d_state, d_conv, expand = 16, 4, 2
    d_inner = expand * dim
    dt_rank = math.ceil(dim / 16)
    A = jnp.broadcast_to(jnp.arange(1, d_state + 1, dtype=jnp.float32)[None, :],
                         (d_inner, d_state))
    in_w = rnd((dim, 2 * d_inner))
    conv_w = rnd((d_conv, d_inner))
    conv_b = rndb((d_inner,))
    xproj_w = rnd((d_inner, dt_rank + 2 * d_state))
    dt_w = rnd((dt_rank, d_inner))
    dt_b = -4.0 + rndb((d_inner,))
    # fold the tiny dt-rank projection into x_proj:
    #   delta = (x @ Wx[:, :r]) @ Wdt + b_dt == x @ (Wx[:, :r] @ Wdt) + b_dt
    w_delta = xproj_w[:, :dt_rank] @ dt_w                    # (d_inner, d_inner)
    xproj_fused_w = jnp.concatenate([w_delta, xproj_w[:, dt_rank:]], axis=1)
    xproj_fused_b = jnp.concatenate([dt_b, jnp.zeros((2 * d_state,), jnp.float32)])
    out_w = rnd((d_inner, dim))
    return dict(
        dim=dim, d_state=d_state, d_conv=d_conv, d_inner=d_inner,
        ln_w=jnp.ones((dim,), jnp.float32), ln_b=jnp.zeros((dim,), jnp.float32),
        in_w=in_w.astype(jnp.bfloat16),
        conv_w=conv_w, conv_b=conv_b,
        xproj_w=xproj_fused_w.astype(jnp.bfloat16), xproj_b=xproj_fused_b,
        AT=jnp.transpose(-A),                                # (d_state, d_inner)
        Dv=jnp.ones((1, d_inner), jnp.float32),
        out_w=out_w.astype(jnp.bfloat16),
    )


def mamba_layer_forward(x, p):
    B, H, W, C = x.shape
    L = H * W
    d_inner, d_state = p["d_inner"], p["d_state"]
    xs = x.reshape(B, L, C)
    xn = layernorm(xs, p["ln_w"], p["ln_b"])
    xz = matmul_bias_act(xn.reshape(B * L, C), p["in_w"],
                         jnp.zeros((2 * d_inner,), jnp.float32))
    xz = xz.reshape(B, L, 2 * d_inner)
    xm, z = xz[..., :d_inner], xz[..., d_inner:]
    xc = dwconv_silu(xm, p["conv_w"], p["conv_b"])           # (B, L, d_inner)
    proj = matmul_bias_act(xc.reshape(B * L, d_inner), p["xproj_w"], p["xproj_b"])
    proj = proj.reshape(B, L, d_inner + 2 * d_state)
    delta = proj[..., :d_inner]
    Bm = proj[..., d_inner:d_inner + d_state]
    Cm = proj[..., d_inner + d_state:]
    # softplus(delta), dt*u, D*u and SiLU(z) gating are fused inside the scan
    y = selective_scan_gated(delta, xc, z, Bm, Cm, p["AT"], p["Dv"])
    # out projection with the residual add fused into the matmul epilogue
    out = matmul_bias_act(y.reshape(B * L, d_inner), p["out_w"],
                          jnp.zeros((C,), jnp.float32),
                          res=xs.reshape(B * L, C))
    return out.reshape(B, H, W, C)


def init_resblock(cin, cout):
    # MONAI UnetResBlock (convs bias=False, instance norm, LeakyReLU 0.01)
    return dict(c1=conv_params(cin, cout, 3, bias=False),
                c2=conv_params(cout, cout, 3, bias=False),
                c3=conv_params(cin, cout, 1, bias=False))


def resblock_forward(x, p):
    out = instnorm_act(conv2d(x, p["c1"], 1, 1), act="lrelu")
    out = instnorm_act(conv2d(out, p["c2"], 1, 1), act="none")
    # lrelu(IN(conv3(x)) + out)   (residual add + lrelu fused into instnorm)
    return instnorm_act(conv2d(x, p["c3"], 1, 0), act="lrelu",
                        res=out, res_after_act=False)


def init_upblock(cin, cout):
    # PyTorch ConvTranspose2d stores weights as (cin, cout, kh, kw); keep that
    # layout and derive the matmul weight so trained checkpoints port directly.
    w_pt = rnd((cin, cout, 2, 2))
    tw = jnp.transpose(w_pt, (0, 2, 3, 1)).reshape(cin, 4 * cout)
    return dict(tw=tw.astype(jnp.bfloat16), cout=cout,
                res=init_resblock(2 * cout, cout))


def upblock_forward(x, skip, p):
    B, H, W, Cin = x.shape
    cout = p["cout"]
    # ConvTranspose2d(kernel=2, stride=2, bias=False) as matmul + interleave
    y = matmul_bias_act(x.reshape(B * H * W, Cin), p["tw"],
                        jnp.zeros((4 * cout,), jnp.float32))
    y = y.reshape(B, H, W, 2, 2, cout).transpose(0, 1, 3, 2, 4, 5)
    y = y.reshape(B, 2 * H, 2 * W, cout)
    y = jnp.concatenate([y, skip], axis=-1)
    return resblock_forward(y, p["res"])


def init_encoder(in_chans, depths, dims):
    ds = [dict(conv=conv_params(in_chans, dims[0], 7))]
    for i in range(3):
        ds.append(dict(conv=conv_params(dims[i], dims[i + 1], 2)))
    gscs = [init_gsc(d) for d in dims]
    stages = [[init_mamba_layer(dims[i]) for _ in range(depths[i])] for i in range(4)]
    mlps = [dict(fc1=conv_params(d, 2 * d, 1), fc2=conv_params(2 * d, d, 1)) for d in dims]
    return dict(ds=ds, gscs=gscs, stages=stages, mlps=mlps)


def encoder_forward(x, p):
    outs = []
    for i in range(4):
        if i == 0:
            x = conv2d(x, p["ds"][0]["conv"], 2, 3)
        else:
            x = instnorm_act(x, act="none")
            x = conv2d(x, p["ds"][i]["conv"], 2, 0)
        x = gsc_forward(x, p["gscs"][i])
        for lp in p["stages"][i]:
            x = mamba_layer_forward(x, lp)
        h = instnorm_act(x, act="none")
        h = conv2d(h, p["mlps"][i]["fc1"], 1, 0, act="gelu")   # GELU fused
        h = conv2d(h, p["mlps"][i]["fc2"], 1, 0)
        outs.append(h)
    return outs


# ----------------------------------------------------------------------------
# full Mamba2D model
# ----------------------------------------------------------------------------
def init_mamba2d(in_chans=1, out_chans=1, depths=(2, 2, 2, 2),
                 feat=(48, 96, 192, 384), hidden=768):
    feat = list(feat)
    return dict(
        backbone=init_encoder(in_chans, list(depths), feat),
        encoder1=init_resblock(in_chans, feat[0]),
        encoder2=init_resblock(feat[0], feat[1]),
        encoder3=init_resblock(feat[1], feat[2]),
        encoder4=init_resblock(feat[2], feat[3]),
        encoder5=init_resblock(feat[3], hidden),
        decoder5=init_upblock(hidden, feat[3]),
        decoder4=init_upblock(feat[3], feat[2]),
        decoder3=init_upblock(feat[2], feat[1]),
        decoder2=init_upblock(feat[1], feat[0]),
        out=dict(wt=rnd((out_chans, feat[0])), b=rndb((out_chans,))),
    )


def mamba2d_forward(x_nchw, p):
    x = jnp.transpose(x_nchw, (0, 2, 3, 1)).astype(jnp.float32)  # NCHW -> NHWC
    vit = encoder_forward(x, p["backbone"])
    enc1 = resblock_forward(x, p["encoder1"])
    enc2 = resblock_forward(vit[0], p["encoder2"])
    enc3 = resblock_forward(vit[1], p["encoder3"])
    enc4 = resblock_forward(vit[2], p["encoder4"])
    enc5 = resblock_forward(vit[3], p["encoder5"])
    dec5 = upblock_forward(enc5, enc4, p["decoder5"])
    dec4 = upblock_forward(dec5, enc3, p["decoder4"])
    dec3 = upblock_forward(dec4, enc2, p["decoder3"])
    dec2 = upblock_forward(dec3, enc1, p["decoder2"])
    out = out_head_sigmoid(dec2, p["out"]["wt"], p["out"]["b"])  # fused sigmoid
    return jnp.transpose(out, (0, 3, 1, 2))                      # back to NCHW


# ----------------------------------------------------------------------------
if __name__ == "__main__":
    B, C, H, W = 2, 1, 32, 32   # 32x32 keeps every encoder stage >= 2x2 spatial
    x = jax.random.normal(jax.random.PRNGKey(0), (B, C, H, W), dtype=jnp.float32)

    params = init_mamba2d(in_chans=C, out_chans=1)

    y = mamba2d_forward(x, params)
    y = jax.block_until_ready(y)

    assert y.shape == (B, 1, H, W), y.shape
    assert y.dtype == jnp.float32
    assert bool(jnp.all(jnp.isfinite(y)))
    print("KERNEL_OK")
</pallas_src>

<mosaic_0001>
module attributes {stable_mosaic.version = 11 : i64} {
  func.func @_mm_kernel(%arg0: i32, %arg1: i32, %arg2: i32, %arg3: memref<512x49xbf16, #tpu.memory_space<vmem>>, %arg4: memref<49x128xbf16, #tpu.memory_space<vmem>>, %arg5: memref<1x128xf32, #tpu.memory_space<vmem>>, %arg6: memref<512x128xf32, #tpu.memory_space<vmem>>) attributes {dimension_semantics = [#tpu.dimension_semantics<parallel>, #tpu.dimension_semantics<parallel>, #tpu.dimension_semantics<arbitrary>], iteration_bounds = array<i64: 1, 1, 1>, scalar_prefetch = 0 : i64, scratch_operands = 0 : i64, tpu.core_type = #tpu.core_type<tc>, window_params = [{transform_indices = @transform_0, window_bounds = array<i64: 512, 49>}, {transform_indices = @transform_1, window_bounds = array<i64: 49, 128>}, {transform_indices = @transform_2, window_bounds = array<i64: 1, 128>}, {transform_indices = @transform_3, window_bounds = array<i64: 512, 128>}]} {
    %c0 = arith.constant 0 : index
    %c0_0 = arith.constant 0 : index
    %0 = vector.load %arg3[%c0, %c0_0] : memref<512x49xbf16, #tpu.memory_space<vmem>>, vector<512x49xbf16>
    %c0_1 = arith.constant 0 : index
    %c0_2 = arith.constant 0 : index
    %1 = vector.load %arg4[%c0_1, %c0_2] : memref<49x128xbf16, #tpu.memory_space<vmem>>, vector<49x128xbf16>
    %cst = arith.constant dense<0.000000e+00> : vector<512x128xf32>
    %2 = tpu.matmul %0, %1, %cst {dimension_numbers = #tpu.dot_dimension_numbers<[1], [0], [0], [1], [0, 0, 1, 1], [], []>} : vector<512x49xbf16>, vector<49x128xbf16>, vector<512x128xf32> -> vector<512x128xf32>
    %c0_3 = arith.constant 0 : index
    %c0_4 = arith.constant 0 : index
    %3 = vector.load %arg5[%c0_3, %c0_4] : memref<1x128xf32, #tpu.memory_space<vmem>>, vector<1x128xf32>
    %4 = vector.broadcast %3 : vector<1x128xf32> to vector<512x128xf32>
    %5 = arith.addf %2, %4 : vector<512x128xf32>
    %c0_5 = arith.constant 0 : index
    %c0_6 = arith.constant 0 : index
    %6 = vector.load %arg6[%c0_5, %c0_6] : memref<512x128xf32, #tpu.memory_space<vmem>>, vector<512x128xf32>
    tpu.vector_store %arg6[%c0_5, %c0_6], %5 {strides = array<i32>} : memref<512x128xf32, #tpu.memory_space<vmem>>, vector<512x128xf32>,
    return
  }
  func.func @transform_0(%arg0: i32, %arg1: i32, %arg2: i32) -> (i32, i32) {
    %c0_i32 = arith.constant 0 : i32
    return %arg0, %arg2 : i32, i32
  }
  func.func @transform_1(%arg0: i32, %arg1: i32, %arg2: i32) -> (i32, i32) {
    %c0_i32 = arith.constant 0 : i32
    return %arg2, %arg1 : i32, i32
  }
  func.func @transform_2(%arg0: i32, %arg1: i32, %arg2: i32) -> (i32, i32) {
    %c0_i32 = arith.constant 0 : i32
    %c0_i32_0 = arith.constant 0 : i32
    return %c0_i32, %arg1 : i32, i32
  }
  func.func @transform_3(%arg0: i32, %arg1: i32, %arg2: i32) -> (i32, i32) {
    %c0_i32 = arith.constant 0 : i32
    return %arg0, %arg1 : i32, i32
  }
}

</mosaic_0001>

<bundles_post_ra>
// kernel: matmul_bias_act.1
= control target key start
LH: loop header
LB: loop body
LE: loop exit
PB: predicated region body
PF: predicated region fallthrough
CT: control target
= control target key end

     0   :  { %vm371_vm0 = vcmask 1040384   ;;  %vm274_vm1 = vcmask 400384   ;;  %v956_v5 = vmov 0   ;;  %s1378_s1 = inlined_call_operand.vmem [shape: bf16[49,128], index: 1, kind: input, shape index: {}]   ;;  %s1379_s0 = inlined_call_operand.vmem [shape: bf16[512,49], index: 0, kind: input, shape index: {}]   ;;  %s1380_s2 = inlined_call_operand.vmem [shape: f32[1,128], index: 2, kind: input, shape index: {}]   ;;  %s1381_s3 = inlined_call_operand.vmem [shape: f32[512,128], index: 3, kind: output, shape index: {}]  }
   0x1   :  { %v920_v0 = vld [vmem:[%s1378_s1] sm:$0xff]   ;;  %v921_v1 = vld [vmem:[%s1378_s1 + $0x8] sm:$0xff]   ;;  %v922_v2 = vld [vmem:[%s1378_s1 + $0x10] sm:$0xff]   ;;  %v373_v6 = vsel %vm371_vm0, 65535, %v956_v5 }
   0x2   :  { %839 = vmatprep.subr.bf16.mxu0 %v920_v0  ;;  %911 = vmatprep.subr.bf16.mxu1 %v920_v0  ;;  %v923_v3 = vld [vmem:[%s1378_s1 + $0x18] ss:$0 sps:$4 sm:$0x11]   ;;  %v924_v4 = vld [vmem:[%s1379_s0] sm:$0xff]   ;;  %v926_v9 = vld [vmem:[%s1379_s0 + $0x8] sm:$0xff]  }
   0x3   :  { %840 = vmatpush3.bf16.msra.mxu0 %v920_v0  ;;  %915 = vmatpush3.bf16.msra.mxu1 %v920_v0  ;;  %v925_v7 = vld [vmem:[%s1379_s0 + $0x80] sm:$0xff]   ;;  %v375_v8 = vand.u32 %v923_v3, %v373_v6  ;;  %v927_v10 = vld [vmem:[%s1379_s0 + $0x88] sm:$0xff]   ;;  %v928_v11 = vld [vmem:[%s1379_s0 + $0x10] sm:$0xff]  }
   0x4   :  { %841 = vmatprep.subr.bf16.mxu0 %v921_v1  ;;  %912 = vmatprep.subr.bf16.mxu1 %v921_v1  ;;  %v929_v12 = vld [vmem:[%s1379_s0 + $0x90] sm:$0xff]   ;;  %v930_v13 = vld [vmem:[%s1379_s0 + $0x18] sm:$0xff]   ;;  %v932_v15 = vld [vmem:[%s1379_s0 + $0x20] sm:$0xff]  }
   0x5   :  { %847 = vmatprep.mubr.msk.bf16.mxu0 %vm274_vm1, %v924_v4  ;;  %879 = vmatprep.mubr.msk.bf16.mxu1 %vm274_vm1, %v925_v7  ;;  %v931_v14 = vld [vmem:[%s1379_s0 + $0x98] sm:$0xff]   ;;  %v933_v16 = vld [vmem:[%s1379_s0 + $0xa0] sm:$0xff]   ;;  %v934_v17 = vld [vmem:[%s1379_s0 + $0x28] sm:$0xff]  }
   0x6   :  { %v935_v18 = vld [vmem:[%s1379_s0 + $0xa8] sm:$0xff]   ;;  %v936_v19 = vld [vmem:[%s1379_s0 + $0x30] sm:$0xff]   ;;  %v938_v21 = vld [vmem:[%s1379_s0 + $0x38] sm:$0xff]  }
   0x7   :  { %842 = vmatpush3.bf16.msra.mxu0 %v921_v1  ;;  %916 = vmatpush3.bf16.msra.mxu1 %v921_v1  ;;  %v937_v20 = vld [vmem:[%s1379_s0 + $0xb0] sm:$0xff]   ;;  %v939_v22 = vld [vmem:[%s1379_s0 + $0xb8] sm:$0xff]   ;;  %v940_v23 = vld [vmem:[%s1379_s0 + $0x40] sm:$0xff]  }
   0x8   :  { %843 = vmatprep.subr.bf16.mxu0 %v922_v2  ;;  %913 = vmatprep.subr.bf16.mxu1 %v922_v2  ;;  %v941_v24 = vld [vmem:[%s1379_s0 + $0xc0] sm:$0xff]   ;;  %v942_v25 = vld [vmem:[%s1379_s0 + $0x48] sm:$0xff]   ;;  %v944_v27 = vld [vmem:[%s1379_s0 + $0x50] sm:$0xff]  }
   0x9   :  { %v943_v26 = vld [vmem:[%s1379_s0 + $0xc8] sm:$0xff]   ;;  %v945_v28 = vld [vmem:[%s1379_s0 + $0xd0] sm:$0xff]   ;;  %v946_v29 = vld [vmem:[%s1379_s0 + $0x58] sm:$0xff]  }
   0xa   :  { %v947_v30 = vld [vmem:[%s1379_s0 + $0xd8] sm:$0xff]   ;;  %v948_v31 = vld [vmem:[%s1379_s0 + $0x60] sm:$0xff]   ;;  %v950_v33 = vld [vmem:[%s1379_s0 + $0x68] sm:$0xff]  }
   0xb   :  { %844 = vmatpush3.bf16.msra.mxu0 %v922_v2  ;;  %917 = vmatpush3.bf16.msra.mxu1 %v922_v2  ;;  %v949_v32 = vld [vmem:[%s1379_s0 + $0xe0] sm:$0xff]   ;;  %v951_v34 = vld [vmem:[%s1379_s0 + $0xe8] sm:$0xff]   ;;  %v952_v35 = vld [vmem:[%s1379_s0 + $0x70] sm:$0xff]  }
   0xc   :  { %845 = vmatprep.subr.bf16.mxu0 %v375_v8  ;;  %914 = vmatprep.subr.bf16.mxu1 %v375_v8  ;;  %v953_v36 = vld [vmem:[%s1379_s0 + $0xf0] sm:$0xff]   ;;  %v954_v37 = vld [vmem:[%s1379_s0 + $0x78] sm:$0xff]   ;;  %v1120_v39 = vld [vmem:[%s1380_s2] ss:$0 sm:$0xff] }
   0xd   :  { %v955_v38 = vld [vmem:[%s1379_s0 + $0xf8] sm:$0xff]  }
   0xf   :  { %846 = vmatpush3.bf16.msra.mxu0 %v375_v8  ;;  %918 = vmatpush3.bf16.msra.mxu1 %v375_v8 }
  0x12   :  { %848 = vmatmul.mubr.msk.bf16.vlgmr.msra.gmra.mrb[0].mxu0 %vm274_vm1, %v926_v9  ;;  %880 = vmatmul.mubr.msk.bf16.vlgmr.msra.gmra.mrb[0].mxu1 %vm274_vm1, %v927_v10 }
  0x13   :  { %851 = vmatprep.mubr.msk.bf16.mxu0 %vm274_vm1, %v928_v11  ;;  %883 = vmatprep.mubr.msk.bf16.mxu1 %vm274_vm1, %v929_v12 }
  0x1a   :  { %852 = vmatmul.mubr.msk.bf16.gmra.mrb[4].mxu0 %vm274_vm1, %v930_v13  ;;  %884 = vmatmul.mubr.msk.bf16.gmra.mrb[4].mxu1 %vm274_vm1, %v931_v14 }
  0x1b   :  { %855 = vmatprep.mubr.msk.bf16.mxu0 %vm274_vm1, %v932_v15  ;;  %887 = vmatprep.mubr.msk.bf16.mxu1 %vm274_vm1, %v933_v16 }
  0x22   :  { %856 = vmatmul.mubr.msk.bf16.gmra.mrb[8].mxu0 %vm274_vm1, %v934_v17  ;;  %888 = vmatmul.mubr.msk.bf16.gmra.mrb[8].mxu1 %vm274_vm1, %v935_v18 }
  0x23   :  { %859 = vmatprep.mubr.msk.bf16.mxu0 %vm274_vm1, %v936_v19  ;;  %891 = vmatprep.mubr.msk.bf16.mxu1 %vm274_vm1, %v937_v20 }
  0x2a   :  { %860 = vmatmul.mubr.msk.bf16.gmra.mrb[12].mxu0 %vm274_vm1, %v938_v21  ;;  %892 = vmatmul.mubr.msk.bf16.gmra.mrb[12].mxu1 %vm274_vm1, %v939_v22 }
  0x2b   :  { %863 = vmatprep.mubr.msk.bf16.mxu0 %vm274_vm1, %v940_v23  ;;  %895 = vmatprep.mubr.msk.bf16.mxu1 %vm274_vm1, %v941_v24 }
  0x32   :  { %864 = vmatmul.mubr.msk.bf16.gmra.mrb[16].mxu0 %vm274_vm1, %v942_v25  ;;  %896 = vmatmul.mubr.msk.bf16.gmra.mrb[16].mxu1 %vm274_vm1, %v943_v26 }
  0x33   :  { %867 = vmatprep.mubr.msk.bf16.mxu0 %vm274_vm1, %v944_v27  ;;  %899 = vmatprep.mubr.msk.bf16.mxu1 %vm274_vm1, %v945_v28 }
  0x3a   :  { %868 = vmatmul.mubr.msk.bf16.gmra.mrb[20].mxu0 %vm274_vm1, %v946_v29  ;;  %900 = vmatmul.mubr.msk.bf16.gmra.mrb[20].mxu1 %vm274_vm1, %v947_v30 }
  0x3b   :  { %871 = vmatprep.mubr.msk.bf16.mxu0 %vm274_vm1, %v948_v31  ;;  %903 = vmatprep.mubr.msk.bf16.mxu1 %vm274_vm1, %v949_v32 }
  0x42   :  { %872 = vmatmul.mubr.msk.bf16.gmra.mrb[24].mxu0 %vm274_vm1, %v950_v33  ;;  %904 = vmatmul.mubr.msk.bf16.gmra.mrb[24].mxu1 %vm274_vm1, %v951_v34 }
  0x43   :  { %875 = vmatprep.mubr.msk.bf16.mxu0 %vm274_vm1, %v952_v35  ;;  %907 = vmatprep.mubr.msk.bf16.mxu1 %vm274_vm1, %v953_v36 }
  0x4a   :  { %876 = vmatmul.mubr.msk.bf16.gmra.mrb[28].mxu0 %vm274_vm1, %v954_v37  ;;  %908 = vmatmul.mubr.msk.bf16.gmra.mrb[28].mxu1 %vm274_vm1, %v955_v38 }
  0xe5   :  { %v849_v40 = vpop.f32.mrb[0].mxu0  ;;  %v881_v41 = vpop.f32.mrb[0].mxu1 }
  0xe6   :  { %v420_v42 = vadd.f32 %v849_v40, %v1120_v39  ;;  %v548_v43 = vadd.f32 %v881_v41, %v1120_v39  ;;  %v411_v44 = vpop.f32.mrb[1].mxu0  ;;  %v539_v45 = vpop.f32.mrb[1].mxu1 }
  0xe7   :  { %v412_v46 = vadd.f32 %v1120_v39, %v411_v44  ;;  %v540_v47 = vadd.f32 %v1120_v39, %v539_v45  ;;  %v850_v48 = vpop.f32.mrb[2].mxu0  ;;  %v882_v49 = vpop.f32.mrb[2].mxu1 }
  0xe8   :  { %668 = vst [vmem:[%s1381_s3 + $0x10] sm:$0xff] %v420_v42  ;;  %700 = vst [vmem:[%s1381_s3 + $0x110] sm:$0xff] %v548_v43  ;;  %v423_v50 = vadd.f32 %v850_v48, %v1120_v39  ;;  %v551_v51 = vadd.f32 %v882_v49, %v1120_v39  ;;  %v414_v52 = vpop.f32.mrb[3].mxu0  ;;  %v542_v53 = vpop.f32.mrb[3].mxu1 }
  0xe9   :  { %666 = vst [vmem:[%s1381_s3] sm:$0xff] %v412_v46  ;;  %698 = vst [vmem:[%s1381_s3 + $0x100] sm:$0xff] %v540_v47  ;;  %v415_v54 = vadd.f32 %v1120_v39, %v414_v52  ;;  %v543_v55 = vadd.f32 %v1120_v39, %v542_v53 }
  0xea   :  { %669 = vst [vmem:[%s1381_s3 + $0x18] sm:$0xff] %v423_v50  ;;  %701 = vst [vmem:[%s1381_s3 + $0x118] sm:$0xff] %v551_v51 }
  0xeb   :  { %667 = vst [vmem:[%s1381_s3 + $0x8] sm:$0xff] %v415_v54  ;;  %699 = vst [vmem:[%s1381_s3 + $0x108] sm:$0xff] %v543_v55 }
  0xed   :  { %v853_v56 = vpop.f32.mrb[4].mxu0  ;;  %v885_v57 = vpop.f32.mrb[4].mxu1 }
  0xee   :  { %v436_v58 = vadd.f32 %v853_v56, %v1120_v39  ;;  %v564_v59 = vadd.f32 %v885_v57, %v1120_v39  ;;  %v427_v60 = vpop.f32.mrb[5].mxu0  ;;  %v555_v61 = vpop.f32.mrb[5].mxu1 }
  0xef   :  { %v428_v62 = vadd.f32 %v1120_v39, %v427_v60  ;;  %v556_v63 = vadd.f32 %v1120_v39, %v555_v61  ;;  %v854_v0 = vpop.f32.mrb[6].mxu0  ;;  %v886_v1 = vpop.f32.mrb[6].mxu1 }
  0xf0   :  { %672 = vst [vmem:[%s1381_s3 + $0x30] sm:$0xff] %v436_v58  ;;  %704 = vst [vmem:[%s1381_s3 + $0x130] sm:$0xff] %v564_v59  ;;  %v439_v2 = vadd.f32 %v854_v0, %v1120_v39  ;;  %v567_v3 = vadd.f32 %v886_v1, %v1120_v39  ;;  %v430_v4 = vpop.f32.mrb[7].mxu0  ;;  %v558_v5 = vpop.f32.mrb[7].mxu1 }
  0xf1   :  { %670 = vst [vmem:[%s1381_s3 + $0x20] sm:$0xff] %v428_v62  ;;  %702 = vst [vmem:[%s1381_s3 + $0x120] sm:$0xff] %v556_v63  ;;  %v431_v6 = vadd.f32 %v1120_v39, %v430_v4  ;;  %v559_v7 = vadd.f32 %v1120_v39, %v558_v5 }
  0xf2   :  { %673 = vst [vmem:[%s1381_s3 + $0x38] sm:$0xff] %v439_v2  ;;  %705 = vst [vmem:[%s1381_s3 + $0x138] sm:$0xff] %v567_v3 }
  0xf3   :  { %671 = vst [vmem:[%s1381_s3 + $0x28] sm:$0xff] %v431_v6  ;;  %703 = vst [vmem:[%s1381_s3 + $0x128] sm:$0xff] %v559_v7 }
  0xf5   :  { %v857_v8 = vpop.f32.mrb[8].mxu0  ;;  %v889_v9 = vpop.f32.mrb[8].mxu1 }
  0xf6   :  { %v452_v10 = vadd.f32 %v857_v8, %v1120_v39  ;;  %v580_v11 = vadd.f32 %v889_v9, %v1120_v39  ;;  %v443_v12 = vpop.f32.mrb[9].mxu0  ;;  %v571_v13 = vpop.f32.mrb[9].mxu1 }
  0xf7   :  { %v444_v14 = vadd.f32 %v1120_v39, %v443_v12  ;;  %v572_v15 = vadd.f32 %v1120_v39, %v571_v13  ;;  %v858_v16 = vpop.f32.mrb[10].mxu0  ;;  %v890_v17 = vpop.f32.mrb[10].mxu1 }
  0xf8   :  { %676 = vst [vmem:[%s1381_s3 + $0x50] sm:$0xff] %v452_v10  ;;  %708 = vst [vmem:[%s1381_s3 + $0x150] sm:$0xff] %v580_v11  ;;  %v455_v18 = vadd.f32 %v858_v16, %v1120_v39  ;;  %v583_v19 = vadd.f32 %v890_v17, %v1120_v39  ;;  %v446_v20 = vpop.f32.mrb[11].mxu0  ;;  %v574_v21 = vpop.f32.mrb[11].mxu1 }
  0xf9   :  { %674 = vst [vmem:[%s1381_s3 + $0x40] sm:$0xff] %v444_v14  ;;  %706 = vst [vmem:[%s1381_s3 + $0x140] sm:$0xff] %v572_v15  ;;  %v447_v22 = vadd.f32 %v1120_v39, %v446_v20  ;;  %v575_v23 = vadd.f32 %v1120_v39, %v574_v21 }
  0xfa   :  { %677 = vst [vmem:[%s1381_s3 + $0x58] sm:$0xff] %v455_v18  ;;  %709 = vst [vmem:[%s1381_s3 + $0x158] sm:$0xff] %v583_v19 }
  0xfb   :  { %675 = vst [vmem:[%s1381_s3 + $0x48] sm:$0xff] %v447_v22  ;;  %707 = vst [vmem:[%s1381_s3 + $0x148] sm:$0xff] %v575_v23 }
  0xfd   :  { %v861_v24 = vpop.f32.mrb[12].mxu0  ;;  %v893_v25 = vpop.f32.mrb[12].mxu1 }
  0xfe   :  { %v468_v26 = vadd.f32 %v861_v24, %v1120_v39  ;;  %v596_v27 = vadd.f32 %v893_v25, %v1120_v39  ;;  %v459_v28 = vpop.f32.mrb[13].mxu0  ;;  %v587_v29 = vpop.f32.mrb[13].mxu1 }
  0xff   :  { %v460_v30 = vadd.f32 %v1120_v39, %v459_v28  ;;  %v588_v31 = vadd.f32 %v1120_v39, %v587_v29  ;;  %v862_v32 = vpop.f32.mrb[14].mxu0  ;;  %v894_v33 = vpop.f32.mrb[14].mxu1 }
 0x100   :  { %680 = vst [vmem:[%s1381_s3 + $0x70] sm:$0xff] %v468_v26  ;;  %712 = vst [vmem:[%s1381_s3 + $0x170] sm:$0xff] %v596_v27  ;;  %v471_v34 = vadd.f32 %v862_v32, %v1120_v39  ;;  %v599_v35 = vadd.f32 %v894_v33, %v1120_v39  ;;  %v462_v36 = vpop.f32.mrb[15].mxu0  ;;  %v590_v37 = vpop.f32.mrb[15].mxu1 }
 0x101   :  { %678 = vst [vmem:[%s1381_s3 + $0x60] sm:$0xff] %v460_v30  ;;  %710 = vst [vmem:[%s1381_s3 + $0x160] sm:$0xff] %v588_v31  ;;  %v463_v38 = vadd.f32 %v1120_v39, %v462_v36  ;;  %v591_v40 = vadd.f32 %v1120_v39, %v590_v37 }
 0x102   :  { %681 = vst [vmem:[%s1381_s3 + $0x78] sm:$0xff] %v471_v34  ;;  %713 = vst [vmem:[%s1381_s3 + $0x178] sm:$0xff] %v599_v35 }
 0x103   :  { %679 = vst [vmem:[%s1381_s3 + $0x68] sm:$0xff] %v463_v38  ;;  %711 = vst [vmem:[%s1381_s3 + $0x168] sm:$0xff] %v591_v40 }
 0x105   :  { %v865_v41 = vpop.f32.mrb[16].mxu0  ;;  %v897_v42 = vpop.f32.mrb[16].mxu1 }
 0x106   :  { %v484_v43 = vadd.f32 %v865_v41, %v1120_v39  ;;  %v612_v44 = vadd.f32 %v897_v42, %v1120_v39  ;;  %v475_v45 = vpop.f32.mrb[17].mxu0  ;;  %v603_v46 = vpop.f32.mrb[17].mxu1 }
 0x107   :  { %v476_v47 = vadd.f32 %v1120_v39, %v475_v45  ;;  %v604_v48 = vadd.f32 %v1120_v39, %v603_v46  ;;  %v866_v49 = vpop.f32.mrb[18].mxu0  ;;  %v898_v50 = vpop.f32.mrb[18].mxu1 }
 0x108   :  { %684 = vst [vmem:[%s1381_s3 + $0x90] sm:$0xff] %v484_v43  ;;  %716 = vst [vmem:[%s1381_s3 + $0x190] sm:$0xff] %v612_v44  ;;  %v487_v51 = vadd.f32 %v866_v49, %v1120_v39  ;;  %v615_v52 = vadd.f32 %v898_v50, %v1120_v39  ;;  %v478_v53 = vpop.f32.mrb[19].mxu0  ;;  %v606_v54 = vpop.f32.mrb[19].mxu1 }
 0x109   :  { %682 = vst [vmem:[%s1381_s3 + $0x80] sm:$0xff] %v476_v47  ;;  %714 = vst [vmem:[%s1381_s3 + $0x180] sm:$0xff] %v604_v48  ;;  %v479_v55 = vadd.f32 %v1120_v39, %v478_v53  ;;  %v607_v56 = vadd.f32 %v1120_v39, %v606_v54 }
 0x10a   :  { %685 = vst [vmem:[%s1381_s3 + $0x98] sm:$0xff] %v487_v51  ;;  %717 = vst [vmem:[%s1381_s3 + $0x198] sm:$0xff] %v615_v52 }
 0x10b   :  { %683 = vst [vmem:[%s1381_s3 + $0x88] sm:$0xff] %v479_v55  ;;  %715 = vst [vmem:[%s1381_s3 + $0x188] sm:$0xff] %v607_v56 }
 0x10d   :  { %v869_v57 = vpop.f32.mrb[20].mxu0  ;;  %v901_v58 = vpop.f32.mrb[20].mxu1 }
 0x10e   :  { %v500_v59 = vadd.f32 %v869_v57, %v1120_v39  ;;  %v628_v60 = vadd.f32 %v901_v58, %v1120_v39  ;;  %v491_v61 = vpop.f32.mrb[21].mxu0  ;;  %v619_v62 = vpop.f32.mrb[21].mxu1 }
 0x10f   :  { %v492_v63 = vadd.f32 %v1120_v39, %v491_v61  ;;  %v620_v0 = vadd.f32 %v1120_v39, %v619_v62  ;;  %v870_v1 = vpop.f32.mrb[22].mxu0  ;;  %v902_v2 = vpop.f32.mrb[22].mxu1 }
 0x110   :  { %688 = vst [vmem:[%s1381_s3 + $0xb0] sm:$0xff] %v500_v59  ;;  %720 = vst [vmem:[%s1381_s3 + $0x1b0] sm:$0xff] %v628_v60  ;;  %v503_v3 = vadd.f32 %v870_v1, %v1120_v39  ;;  %v631_v4 = vadd.f32 %v902_v2, %v1120_v39  ;;  %v494_v5 = vpop.f32.mrb[23].mxu0  ;;  %v622_v6 = vpop.f32.mrb[23].mxu1 }
 0x111   :  { %686 = vst [vmem:[%s1381_s3 + $0xa0] sm:$0xff] %v492_v63  ;;  %718 = vst [vmem:[%s1381_s3 + $0x1a0] sm:$0xff] %v620_v0  ;;  %v495_v7 = vadd.f32 %v1120_v39, %v494_v5  ;;  %v623_v8 = vadd.f32 %v1120_v39, %v622_v6 }
 0x112   :  { %689 = vst [vmem:[%s1381_s3 + $0xb8] sm:$0xff] %v503_v3  ;;  %721 = vst [vmem:[%s1381_s3 + $0x1b8] sm:$0xff] %v631_v4 }
 0x113   :  { %687 = vst [vmem:[%s1381_s3 + $0xa8] sm:$0xff] %v495_v7  ;;  %719 = vst [vmem:[%s1381_s3 + $0x1a8] sm:$0xff] %v623_v8 }
 0x115   :  { %v873_v9 = vpop.f32.mrb[24].mxu0  ;;  %v905_v10 = vpop.f32.mrb[24].mxu1 }
 0x116   :  { %v516_v11 = vadd.f32 %v873_v9, %v1120_v39  ;;  %v644_v12 = vadd.f32 %v905_v10, %v1120_v39  ;;  %v507_v13 = vpop.f32.mrb[25].mxu0  ;;  %v635_v14 = vpop.f32.mrb[25].mxu1 }
 0x117   :  { %v508_v15 = vadd.f32 %v1120_v39, %v507_v13  ;;  %v636_v16 = vadd.f32 %v1120_v39, %v635_v14  ;;  %v874_v17 = vpop.f32.mrb[26].mxu0  ;;  %v906_v18 = vpop.f32.mrb[26].mxu1 }
 0x118   :  { %692 = vst [vmem:[%s1381_s3 + $0xd0] sm:$0xff] %v516_v11  ;;  %724 = vst [vmem:[%s1381_s3 + $0x1d0] sm:$0xff] %v644_v12  ;;  %v519_v19 = vadd.f32 %v874_v17, %v1120_v39  ;;  %v647_v20 = vadd.f32 %v906_v18, %v1120_v39  ;;  %v510_v21 = vpop.f32.mrb[27].mxu0  ;;  %v638_v22 = vpop.f32.mrb[27].mxu1 }
 0x119   :  { %690 = vst [vmem:[%s1381_s3 + $0xc0] sm:$0xff] %v508_v15  ;;  %722 = vst [vmem:[%s1381_s3 + $0x1c0] sm:$0xff] %v636_v16  ;;  %v511_v23 = vadd.f32 %v1120_v39, %v510_v21  ;;  %v639_v24 = vadd.f32 %v1120_v39, %v638_v22 }
 0x11a   :  { %693 = vst [vmem:[%s1381_s3 + $0xd8] sm:$0xff] %v519_v19  ;;  %725 = vst [vmem:[%s1381_s3 + $0x1d8] sm:$0xff] %v647_v20 }
 0x11b   :  { %691 = vst [vmem:[%s1381_s3 + $0xc8] sm:$0xff] %v511_v23  ;;  %723 = vst [vmem:[%s1381_s3 + $0x1c8] sm:$0xff] %v639_v24 }
 0x11d   :  { %v877_v25 = vpop.f32.mrb[28].mxu0  ;;  %v909_v26 = vpop.f32.mrb[28].mxu1 }
 0x11e   :  { %v532_v27 = vadd.f32 %v877_v25, %v1120_v39  ;;  %v660_v28 = vadd.f32 %v909_v26, %v1120_v39  ;;  %v523_v29 = vpop.f32.mrb[29].mxu0  ;;  %v651_v30 = vpop.f32.mrb[29].mxu1 }
 0x11f   :  { %v524_v31 = vadd.f32 %v1120_v39, %v523_v29  ;;  %v652_v32 = vadd.f32 %v1120_v39, %v651_v30  ;;  %v878_v33 = vpop.f32.mrb[30].mxu0  ;;  %v910_v34 = vpop.f32.mrb[30].mxu1 }
 0x120   :  { %696 = vst [vmem:[%s1381_s3 + $0xf0] sm:$0xff] %v532_v27  ;;  %728 = vst [vmem:[%s1381_s3 + $0x1f0] sm:$0xff] %v660_v28  ;;  %v535_v35 = vadd.f32 %v878_v33, %v1120_v39  ;;  %v663_v36 = vadd.f32 %v910_v34, %v1120_v39  ;;  %v526_v37 = vpop.f32.mrb[31].mxu0  ;;  %v654_v38 = vpop.f32.mrb[31].mxu1 }
 0x121   :  { %694 = vst [vmem:[%s1381_s3 + $0xe0] sm:$0xff] %v524_v31  ;;  %726 = vst [vmem:[%s1381_s3 + $0x1e0] sm:$0xff] %v652_v32  ;;  %v527_v40 = vadd.f32 %v1120_v39, %v526_v37  ;;  %v655_v41 = vadd.f32 %v1120_v39, %v654_v38 }
 0x122   :  { %697 = vst [vmem:[%s1381_s3 + $0xf8] sm:$0xff] %v535_v35  ;;  %729 = vst [vmem:[%s1381_s3 + $0x1f8] sm:$0xff] %v663_v36 }
 0x123   :  { %695 = vst [vmem:[%s1381_s3 + $0xe8] sm:$0xff] %v527_v40  ;;  %727 = vst [vmem:[%s1381_s3 + $0x1e8] sm:$0xff] %v655_v41 }

</bundles_post_ra>
